<compile_context>
chip_gen: v6e
topology: v6e:2x2x1
jax: 0.10.0
libtpu: 0.0.40
codegen_flags: <defaults>
</compile_context>

<pallas_src>
import functools

import jax
import jax.numpy as jnp
from jax.experimental import pallas as pl
from jax.experimental.pallas import tpu as pltpu


def _categorical_kernel(x_ref, w_ref, b_ref, logits_ref, probs_ref):
    # x_ref:      (TB, D) bf16   activation tile (batch-blocked)
    # w_ref:      (D,  N) bf16   pre-transposed Linear weight (VMEM-resident)
    # b_ref:      (1,  N) f32    bias (VMEM-resident)
    # logits_ref: (TB, N) f32    log_softmax(y)
    # probs_ref:  (TB, N) f32    softmax(y)
    y = jnp.dot(x_ref[...], w_ref[...],
                preferred_element_type=jnp.float32) + b_ref[...]

    # Numerically-stable log_softmax along the last axis (all f32).
    m = jnp.max(y, axis=-1, keepdims=True)
    shifted = y - m
    e = jnp.exp(shifted)
    denom = jnp.sum(e, axis=-1, keepdims=True)
    logits = shifted - jnp.log(denom)

    logits_ref[...] = logits
    # probs = exp(log_softmax): EUP exp slot, no VALU divide, and exactly
    # consistent with the logits we return.
    probs_ref[...] = jnp.exp(logits)


def prepare_params(weight, bias):
    """One-time layout/dtype prep (do at parameter creation, not per call).

    weight: (N, D) PyTorch Linear layout -> returned as (D, N) bf16.
    bias:   (N,)                         -> returned as (1, N) f32.
    """
    w_dn = jnp.asarray(weight, jnp.float32).T.astype(jnp.bfloat16)  # (D, N)
    b2d = jnp.asarray(bias, jnp.float32).reshape(1, -1)             # (1, N)
    return w_dn, b2d


def _pick_batch_tile(batch, d, n, vmem_budget=24 * 1024 * 1024):
    """Largest batch tile that keeps double-buffered tiles inside VMEM budget."""
    # Resident params (assume double-buffered to be safe): bf16 weight + f32 bias.
    resident = 2 * (d * n * 2 + n * 4)
    # Per batch-row, double-buffered: bf16 x tile + two f32 output tiles.
    per_row = 2 * (d * 2) + 2 * 2 * (n * 4)
    tb_cap = max(8, (vmem_budget - resident) // max(per_row, 1))
    tb = min(batch, 1024, tb_cap)
    if tb < batch:
        # Actually blocking the batch: keep the sublane dim a multiple of 8.
        tb = max(8, (tb // 8) * 8)
    return tb


@functools.partial(jax.jit, static_argnames=())
def categorical_forward(x, w_dn, b2d):
    """Returns (log_softmax_logits, probs), both (B, N) float32."""
    B, D = x.shape
    N = w_dn.shape[1]
    tb = _pick_batch_tile(B, D, N)
    grid = (pl.cdiv(B, tb),)

    x_bf16 = x.astype(jnp.bfloat16)

    cost = pl.CostEstimate(
        flops=2 * B * D * N,
        transcendentals=3 * B * N,  # exp(shifted), log(denom), exp(logits)
        bytes_accessed=(x_bf16.size * 2 + w_dn.size * 2 + b2d.size * 4
                        + 2 * B * N * 4),
    )

    logits, probs = pl.pallas_call(
        _categorical_kernel,
        out_shape=(
            jax.ShapeDtypeStruct((B, N), jnp.float32),
            jax.ShapeDtypeStruct((B, N), jnp.float32),
        ),
        grid=grid,
        in_specs=[
            pl.BlockSpec((tb, D), lambda i: (i, 0)),  # batch-blocked activations
            pl.BlockSpec((D, N), lambda i: (0, 0)),   # weight stays resident
            pl.BlockSpec((1, N), lambda i: (0, 0)),   # bias stays resident
        ],
        out_specs=(
            pl.BlockSpec((tb, N), lambda i: (i, 0)),
            pl.BlockSpec((tb, N), lambda i: (i, 0)),
        ),
        compiler_params=pltpu.CompilerParams(
            dimension_semantics=("parallel",),        # megacore / v7x dual-TC
            vmem_limit_bytes=32 * 1024 * 1024,        # safe on v5e/v6e/v7x
        ),
        cost_estimate=cost,
    )(x_bf16, w_dn, b2d)
    return logits, probs


def orthogonal_init(key, out_dim, in_dim, gain):
    """Deterministic orthogonal init matching nn.init.orthogonal_ semantics."""
    rows, cols = out_dim, in_dim
    flat = jax.random.normal(key, (max(rows, cols), min(rows, cols)),
                             dtype=jnp.float32)
    q, r = jnp.linalg.qr(flat)
    d = jnp.sign(jnp.diagonal(r))   # make decomposition unique
    q = q * d[None, :]
    if rows < cols:
        q = q.T
    return gain * q[:rows, :cols]


if __name__ == "__main__":
    key = jax.random.PRNGKey(0)
    k_x, k_w = jax.random.split(key)

    batch = 8
    num_inputs = 32
    num_outputs = 16

    # Parameters: orthogonal weight with gain=0.01, zero bias (as in init_).
    weight = orthogonal_init(k_w, num_outputs, num_inputs, gain=0.01)  # (N, D)
    bias = jnp.zeros((num_outputs,), dtype=jnp.float32)
    w_dn, b2d = prepare_params(weight, bias)   # one-time, outside the hot path

    x = jax.random.normal(k_x, (batch, num_inputs), dtype=jnp.float32)

    logits, probs = categorical_forward(x, w_dn, b2d)
    jax.block_until_ready((logits, probs))

    # Reference using the SAME bf16-rounded inputs the kernel consumed.
    x_r = x.astype(jnp.bfloat16).astype(jnp.float32)
    w_r = w_dn.astype(jnp.float32)              # (D, N)
    y_ref = x_r @ w_r + b2d
    logits_ref = jax.nn.log_softmax(y_ref, axis=-1)
    probs_ref = jax.nn.softmax(y_ref, axis=-1)
    assert jnp.allclose(logits, logits_ref, atol=1e-5), "logits mismatch"
    assert jnp.allclose(probs, probs_ref, atol=1e-5), "probs mismatch"
    assert jnp.allclose(jnp.sum(probs, axis=-1), 1.0, atol=1e-5), "probs not normalized"

    # Loose check vs the full-f32 math (difference is only bf16 input rounding).
    y_f32 = x @ weight.T + bias[None, :]
    assert jnp.allclose(logits, jax.nn.log_softmax(y_f32, axis=-1), atol=1e-3), \
        "bf16 drift too large"

    print("KERNEL_OK")
</pallas_src>

<mosaic_0001>
module attributes {stable_mosaic.version = 11 : i64} {
  func.func @_categorical_kernel(%arg0: i32, %arg1: memref<8x32xbf16, #tpu.memory_space<vmem>>, %arg2: memref<32x16xbf16, #tpu.memory_space<vmem>>, %arg3: memref<1x16xf32, #tpu.memory_space<vmem>>, %arg4: memref<8x16xf32, #tpu.memory_space<vmem>>, %arg5: memref<8x16xf32, #tpu.memory_space<vmem>>) attributes {dimension_semantics = [#tpu.dimension_semantics<parallel>], iteration_bounds = array<i64: 1>, scalar_prefetch = 0 : i64, scratch_operands = 0 : i64, tpu.core_type = #tpu.core_type<tc>, window_params = [{transform_indices = @transform_0, window_bounds = array<i64: 8, 32>}, {pipeline_mode = #tpu.pipeline_mode<synchronous>, transform_indices = @transform_1, window_bounds = array<i64: 32, 16>}, {pipeline_mode = #tpu.pipeline_mode<synchronous>, transform_indices = @transform_2, window_bounds = array<i64: 1, 16>}, {transform_indices = @transform_3, window_bounds = array<i64: 8, 16>}, {transform_indices = @transform_4, window_bounds = array<i64: 8, 16>}]} {
    %c0 = arith.constant 0 : index
    %c0_0 = arith.constant 0 : index
    %0 = vector.load %arg1[%c0, %c0_0] : memref<8x32xbf16, #tpu.memory_space<vmem>>, vector<8x32xbf16>
    %c0_1 = arith.constant 0 : index
    %c0_2 = arith.constant 0 : index
    %1 = vector.load %arg2[%c0_1, %c0_2] : memref<32x16xbf16, #tpu.memory_space<vmem>>, vector<32x16xbf16>
    %cst = arith.constant dense<0.000000e+00> : vector<8x16xf32>
    %2 = tpu.matmul %0, %1, %cst {dimension_numbers = #tpu.dot_dimension_numbers<[1], [0], [0], [1], [0, 0, 1, 1], [], []>} : vector<8x32xbf16>, vector<32x16xbf16>, vector<8x16xf32> -> vector<8x16xf32>
    %c0_3 = arith.constant 0 : index
    %c0_4 = arith.constant 0 : index
    %3 = vector.load %arg3[%c0_3, %c0_4] : memref<1x16xf32, #tpu.memory_space<vmem>>, vector<1x16xf32>
    %4 = vector.broadcast %3 : vector<1x16xf32> to vector<8x16xf32>
    %5 = arith.addf %2, %4 : vector<8x16xf32>
    %cst_5 = arith.constant dense<0xFF800000> : vector<8xf32>
    %6 = vector.multi_reduction <maximumf>, %5, %cst_5 [1] : vector<8x16xf32> to vector<8xf32>
    %7 = vector.shape_cast %6 : vector<8xf32> to vector<8x1xf32>
    %8 = vector.broadcast %7 : vector<8x1xf32> to vector<8x16xf32>
    %9 = arith.subf %5, %8 : vector<8x16xf32>
    %10 = math.exp %9 : vector<8x16xf32>
    %cst_6 = arith.constant dense<0.000000e+00> : vector<8xf32>
    %11 = vector.multi_reduction <add>, %10, %cst_6 [1] : vector<8x16xf32> to vector<8xf32>
    %12 = vector.shape_cast %11 : vector<8xf32> to vector<8x1xf32>
    %13 = math.log %12 : vector<8x1xf32>
    %14 = vector.broadcast %13 : vector<8x1xf32> to vector<8x16xf32>
    %15 = arith.subf %9, %14 : vector<8x16xf32>
    %c0_7 = arith.constant 0 : index
    %c0_8 = arith.constant 0 : index
    %16 = vector.load %arg4[%c0_7, %c0_8] : memref<8x16xf32, #tpu.memory_space<vmem>>, vector<8x16xf32>
    tpu.vector_store %arg4[%c0_7, %c0_8], %15 {strides = array<i32>} : memref<8x16xf32, #tpu.memory_space<vmem>>, vector<8x16xf32>,
    %17 = math.exp %15 : vector<8x16xf32>
    %c0_9 = arith.constant 0 : index
    %c0_10 = arith.constant 0 : index
    %18 = vector.load %arg5[%c0_9, %c0_10] : memref<8x16xf32, #tpu.memory_space<vmem>>, vector<8x16xf32>
    tpu.vector_store %arg5[%c0_9, %c0_10], %17 {strides = array<i32>} : memref<8x16xf32, #tpu.memory_space<vmem>>, vector<8x16xf32>,
    return
  }
  func.func @transform_0(%arg0: i32) -> (i32, i32) {
    %c0_i32 = arith.constant 0 : i32
    %c0_i32_0 = arith.constant 0 : i32
    return %arg0, %c0_i32 : i32, i32
  }
  func.func @transform_1(%arg0: i32) -> (i32, i32) {
    %c0_i32 = arith.constant 0 : i32
    %c0_i32_0 = arith.constant 0 : i32
    %c0_i32_1 = arith.constant 0 : i32
    return %c0_i32, %c0_i32_0 : i32, i32
  }
  func.func @transform_2(%arg0: i32) -> (i32, i32) {
    %c0_i32 = arith.constant 0 : i32
    %c0_i32_0 = arith.constant 0 : i32
    %c0_i32_1 = arith.constant 0 : i32
    return %c0_i32, %c0_i32_0 : i32, i32
  }
  func.func @transform_3(%arg0: i32) -> (i32, i32) {
    %c0_i32 = arith.constant 0 : i32
    %c0_i32_0 = arith.constant 0 : i32
    return %arg0, %c0_i32 : i32, i32
  }
  func.func @transform_4(%arg0: i32) -> (i32, i32) {
    %c0_i32 = arith.constant 0 : i32
    %c0_i32_0 = arith.constant 0 : i32
    return %arg0, %c0_i32 : i32, i32
  }
}

</mosaic_0001>

<bundles_post_ra>
// kernel: categorical_forward.1
= control target key start
LH: loop header
LB: loop body
LE: loop exit
PB: predicated region body
PF: predicated region fallthrough
CT: control target
= control target key end

     0   :  { %10 = vsyncpa [#allocation3], 0  ;;  %v203_v1 = vmov 0.0   ;;  %vm204_vm0 = vmmov 0   ;;  %s254_s0 = inlined_call_operand.vmem [shape: bf16[8,32], index: 0, kind: input, shape index: {}]   ;;  %s255_s1 = inlined_call_operand.vmem [shape: bf16[32,16], index: 1, kind: input, shape index: {}]   ;;  %s256_s2 = inlined_call_operand.vmem [shape: f32[1,16], index: 2, kind: input, shape index: {}]   ;;  %s257_s3 = inlined_call_operand.hbm [shape: f32[8,16], index: 3, kind: output, shape index: {0}]   ;;  %s258_s4 = inlined_call_operand.hbm [shape: f32[8,16], index: 4, kind: output, shape index: {1}]  }
   0x1   :  { %v151_v0 = vld [vmem:[%s255_s1 + $0x8] sm:$0xff]   ;;  %139 = vmatprep.subr.bf16.mxu0 %v203_v1  ;;  %v152_v2 = vld [vmem:[%s255_s1] sm:$0xff]   ;;  %143 = vmatprep.mubr.msk.bf16.mxu0 %vm204_vm0, %v203_v1 }
   0x2   :  { %140 = vmatpush3.bf16.msra.mxu0 %v151_v0 }
   0x3   :  { %141 = vmatprep.subr.bf16.mxu0 %v203_v1 }
   0x4   :  { %11 = vsyncpa [#allocation5], 0  ;;  %v19_v3 = vld [vmem:[%s254_s0] sm:$0xf]  ;;  %vm43_vm1 = vcmask 261120   ;;  %vm87_vm2 = vcmask 130048  }
   0x5   :  { %v132_v4 = vld [vmem:[%s256_s2] ss:$0 sm:$0xff]  ;;  %s205_s0 = smov [#allocation2]  }
   0x6   :  { %142 = vmatpush3.bf16.msra.mxu0 %v152_v2  ;;  %s110_s1 = sshll.u32 %s205_s0, 4  ;;  %s111_s1 = int_to_ptr.vmem [resolvable:$true] %s110_s1 }
   0x7   :  { %s159_s2 = scalar_lea.vmem %s111_s1, 128  ;;  %p164_p1 = scmp.lt.s32.totalorder %s111_s1, %s111_s1 }
   0x8   :  { %p160_p0 = scmp.ne.s32.totalorder %s111_s1, %s159_s2  ;;  %p165_p2 = scmp.lt.s32.totalorder %s159_s2, %s159_s2 }
   0x9   :  { %144 = vmatmul.mubr.msk.bf16.vlgmr.msra.gmra.mxu0 %vm43_vm1, %v19_v3 }
   0xa   :  { %p166_p3 = por %p165_p2, %p164_p1 }
   0xc   :  { %p167_p4 = pnand %p166_p3, %p160_p0 }
  0xc9   :  { %v81_v5 = vpop.f32.mrf.mxu0 }
  0xca   :  { %v82_v6 = vadd.f32 %v132_v4, %v81_v5 }
  0xcb   :  { %v145_v7 = vpop.f32.mrf.mxu0 }
  0xcc   :  { %v88_v8 = vsel %vm87_vm2, %v82_v6, -inf }
  0xcd   :  { %89 = vmax.xlane.f32.xlu0 %v88_v8  ;;  %v84_v9 = vpop.f32.mrf.mxu0 }
  0xcf   :  { %v146_v10 = vpop.f32.mrf.mxu0 }
 0x156   :  { %v90_v11 = vpop.xlane.xlu0 %89 }
 0x157   :  { %v91_v12 = vsub.f32 %v82_v6, %v90_v11 }
 0x159   :  { %v92_v13 = vmul.f32 1.442695, %v91_v12 }
 0x15b   :  { %153 = vpow2.f32 %v92_v13 }
 0x168   :  { %v154_v14 = vpop.eup %153 }
 0x169   :  { %v94_v15 = vsel %vm87_vm2, %v154_v14, 0.0 }
 0x16a   :  { %95 = vadd.xlane.f32.xlu0 %v94_v15 }
 0x1f3   :  { %v96_v16 = vpop.xlane.xlu0 %95 }
 0x1f4   :  { %155 = vlog2.f32 %v96_v16 }
 0x201   :  { %v156_v17 = vpop.eup %155 }
 0x202   :  { %v98_v18 = vmul.f32 0.6931472, %v156_v17 }
 0x204   :  { %v99_v19 = vsub.f32 %v91_v12, %v98_v18 }
 0x206   :  { %100 = vst.msk [vmem:[#allocation2] sm:$0xff] %vm87_vm2, %v99_v19  ;;  %v101_v20 = vmul.f32 1.442695, %v99_v19 }
 0x207   :  { %170 = shalt.err (!%p167_p4)
}
 0x208   :  { %113 = dma.vmem_to_hbm [thread:$0]  %s111_s1, 128, %s257_s3, [#allocation3]   ;;  %157 = vpow2.f32 %v101_v20 }
 0x209   :  { %s206_s25 = smov [#allocation4]  }
 0x20a   :  { %s120_s26 = sshll.u32 %s206_s25, 4  ;;  %s121_s26 = int_to_ptr.vmem [resolvable:$true] %s120_s26 }
 0x20b   :  { %s179_s27 = scalar_lea.vmem %s121_s26, 128  ;;  %p184_p6 = scmp.lt.s32.totalorder %s121_s26, %s121_s26 }
 0x20c   :  { %p180_p5 = scmp.ne.s32.totalorder %s121_s26, %s179_s27  ;;  %p185_p7 = scmp.lt.s32.totalorder %s179_s27, %s179_s27 }
 0x20e   :  { %p186_p8 = por %p185_p7, %p184_p6 }
 0x210   :  { %p187_p9 = pnand %p186_p8, %p180_p5 }
 0x215   :  { %v158_v21 = vpop.eup %157 }
 0x216   :  { %103 = vst.msk [vmem:[#allocation4] sm:$0xff] %vm87_vm2, %v158_v21 }
 0x217   :  { %190 = shalt.err (!%p187_p9)
}
 0x218   :  { %123 = dma.vmem_to_hbm [thread:$0]  %s121_s26, 128, %s258_s4, [#allocation5]  }
 0x219   :  { %199 = dma.done.wait [#allocation3], 128  }
 0x21a   :  { %200 = vsyncadd [#allocation3], 4294967168 }
 0x21b   :  { %201 = dma.done.wait [#allocation5], 128  }
 0x21c   :  { %202 = vsyncadd [#allocation5], 4294967168 }
 0x21d   :  { %130 = vsyncpa [#allocation3], 1 }
 0x21e   :  { %131 = vsyncpa [#allocation5], 1 }

</bundles_post_ra>
